<compile_context>
chip_gen: v6e
topology: v6e:2x2x1
jax: 0.10.0
libtpu: 0.0.40
codegen_flags: <defaults>
</compile_context>

<pallas_src>
import functools

import jax
import jax.numpy as jnp
import numpy as np
from jax.experimental import pallas as pl
from jax.experimental.pallas import tpu as pltpu

NEG_INF = -1e10          # matches torch masked_fill(-10000000000.0)
LN_EPS = 1e-5
LRELU_SLOPE = 0.2
COMPUTE_DTYPE = jnp.bfloat16   # matmul-operand dtype (f32 MXU accumulation everywhere)
ATTN_DTYPE = jnp.bfloat16      # dtype of the returned attention matrix


# ------------------------------ per-generation configuration --------------------------- #

@functools.lru_cache(maxsize=1)
def _tpu_config():
    kind = ""
    try:
        kind = jax.devices()[0].device_kind.lower()
    except Exception:
        pass
    if "v7" in kind:
        # 64 MiB physical VMEM: leave headroom for compiler-internal scratch.
        return dict(vmem_limit=48 * 1024 * 1024, tq_max=256, tile_rows=256)
    if any(g in kind for g in ("v4", "v5", "v6")):
        # 128 MiB physical VMEM: bigger tiles amortize the ~0.35us per-step overhead.
        return dict(vmem_limit=100 * 1024 * 1024, tq_max=512, tile_rows=512)
    return dict(vmem_limit=64 * 1024 * 1024, tq_max=256, tile_rows=256)


def _pick_tq(lq, lk, n_head, d_model, d_v, vmem_limit, tq_max):
    """Size the q tile from the real per-step VMEM footprint (double-buffered blocks)."""
    attn_b = jnp.dtype(ATTN_DTYPE).itemsize
    comp_b = jnp.dtype(COMPUTE_DTYPE).itemsize
    # Blocks independent of tq (x2 = double buffer), plus the single-buffered vp scratch.
    fixed = 2 * (4 * lk * d_model                       # v (f32)
                 + 4 * n_head * lk                      # sk (f32)
                 + comp_b * d_model * n_head * d_v)     # wv_t
    fixed += comp_b * lk * n_head * d_v                 # vp VMEM scratch
    per_row = 2 * (attn_b * n_head * lk                 # attn output block (dominant)
                   + lk                                 # mask (int8)
                   + 4 * n_head                         # sq (f32)
                   + comp_b * n_head * d_v)             # out slab
    budget = int(vmem_limit * 0.6)
    cap = max((budget - fixed) // max(per_row, 1), 16)
    tq = min(tq_max, int(cap))
    if lq <= tq:
        return lq
    return max(16, (tq // 16) * 16)   # multiple of 16 keeps bf16 blocks tile-aligned


# ----------------------------- map-based attention kernel ------------------------------ #

def _make_map_attn_kernel(n_head, d_v):
    def kernel(sq_ref, sk_ref, v_ref, wv_ref, mask_ref, out_ref, attn_ref, vp_ref):
        # Fused V projection: computed once per batch (first q-tile), cached in VMEM.
        @pl.when(pl.program_id(1) == 0)
        def _():
            vp_ref[...] = jnp.dot(v_ref[0].astype(vp_ref.dtype), wv_ref[...],
                                  preferred_element_type=jnp.float32).astype(vp_ref.dtype)

        sq = sq_ref[0]             # (tq, n_head)  folded q-scores (f32)
        sk = sk_ref[0]             # (n_head, lk)  folded k-scores (f32)
        neg = mask_ref[0] != 0     # (tq, lk) bool; True => masked

        for h in range(n_head):    # n_head small & static -> unrolled
            scores = sq[:, h:h + 1] + sk[h:h + 1, :]          # (tq, lk) broadcast add
            scores = jnp.where(neg, NEG_INF, scores)
            m = jnp.max(scores, axis=-1, keepdims=True)
            e = jnp.exp(scores - m)
            s = jnp.sum(e, axis=-1, keepdims=True)
            attn = e * (1.0 / s)   # exact normalization (attn is returned to the caller)
            attn_ref[h, 0] = attn.astype(attn_ref.dtype)
            # Direct per-head slice store (no lane-axis concatenate / relayout copies).
            out_ref[0, :, h * d_v:(h + 1) * d_v] = jnp.dot(
                attn.astype(vp_ref.dtype), vp_ref[:, h * d_v:(h + 1) * d_v],
                preferred_element_type=jnp.float32).astype(out_ref.dtype)
    return kernel


def map_attention(sq, sk, v, wv_t, mask_i8, *, n_head, d_v, cfg):
    b, lq, _ = sq.shape
    _, lk, d_model = v.shape
    tq = _pick_tq(lq, lk, n_head, d_model, d_v, cfg["vmem_limit"], cfg["tq_max"])
    grid = (b, pl.cdiv(lq, tq))
    out, attn = pl.pallas_call(
        _make_map_attn_kernel(n_head, d_v),
        out_shape=(jax.ShapeDtypeStruct((b, lq, n_head * d_v), COMPUTE_DTYPE),
                   jax.ShapeDtypeStruct((n_head, b, lq, lk), ATTN_DTYPE)),
        grid=grid,
        in_specs=[
            pl.BlockSpec((1, tq, n_head), lambda i, t: (i, t, 0)),           # sq
            pl.BlockSpec((1, n_head, lk), lambda i, t: (i, 0, 0)),           # sk
            pl.BlockSpec((1, lk, d_model), lambda i, t: (i, 0, 0)),          # v rows (per batch)
            pl.BlockSpec((d_model, n_head * d_v), lambda i, t: (0, 0)),      # wv_t (resident)
            pl.BlockSpec((1, tq, lk), lambda i, t: (i, t, 0)),               # mask (int8)
        ],
        out_specs=(
            pl.BlockSpec((1, tq, n_head * d_v), lambda i, t: (i, t, 0)),     # lane-dense out
            pl.BlockSpec((n_head, 1, tq, lk), lambda i, t: (0, i, t, 0)),    # attn, head-major
        ),
        scratch_shapes=[pltpu.VMEM((lk, n_head * d_v), COMPUTE_DTYPE)],      # cached V slab
        compiler_params=pltpu.CompilerParams(
            # q-tile axis must be "arbitrary": the vp scratch is filled at t==0 and reused.
            dimension_semantics=("parallel", "arbitrary"),
            vmem_limit_bytes=cfg["vmem_limit"]),
    )(sq, sk, v, wv_t, mask_i8)
    return out, attn


# --------------------- fused fc + LeakyReLU + residual + LayerNorm ---------------------- #

def _fc_ln_kernel(x_ref, res_ref, wt_ref, b_ref, g_ref, beta_ref, o_ref):
    y = jnp.dot(x_ref[...], wt_ref[...], preferred_element_type=jnp.float32) + b_ref[...]
    y = jnp.where(y >= 0, y, LRELU_SLOPE * y)          # LeakyReLU(0.2)
    y = y + res_ref[...]
    mean = jnp.mean(y, axis=-1, keepdims=True)
    var = jnp.mean(jnp.square(y - mean), axis=-1, keepdims=True)
    yn = (y - mean) * jax.lax.rsqrt(var + LN_EPS)
    o_ref[...] = (yn * g_ref[...] + beta_ref[...]).astype(o_ref.dtype)


def fc_leaky_residual_layernorm(x2d, res2d, fc_wt, fc_b, ln_g, ln_b, *, cfg):
    M, d_in = x2d.shape
    d_model = fc_wt.shape[1]
    tm = M if M <= cfg["tile_rows"] else cfg["tile_rows"]
    return pl.pallas_call(
        _fc_ln_kernel,
        out_shape=jax.ShapeDtypeStruct((M, d_model), jnp.float32),
        grid=(pl.cdiv(M, tm),),
        in_specs=[
            pl.BlockSpec((tm, d_in), lambda i: (i, 0)),        # bf16 attention output slab
            pl.BlockSpec((tm, d_model), lambda i: (i, 0)),     # f32 residual (q)
            pl.BlockSpec((d_in, d_model), lambda i: (0, 0)),   # bf16 fc weight (resident)
            pl.BlockSpec((1, d_model), lambda i: (0, 0)),
            pl.BlockSpec((1, d_model), lambda i: (0, 0)),
            pl.BlockSpec((1, d_model), lambda i: (0, 0)),
        ],
        out_specs=pl.BlockSpec((tm, d_model), lambda i: (i, 0)),
        compiler_params=pltpu.CompilerParams(
            dimension_semantics=("parallel",),
            vmem_limit_bytes=cfg["vmem_limit"]),
    )(x2d, res2d, fc_wt, fc_b, ln_g, ln_b)


# ---------------------------------- wrapper / params ------------------------------------ #

def prepare_params(params, *, n_head, d_k, d_v):
    """One-time weight preprocessing: map-fold of Wq/Wk, pre-transposed bf16 matmul weights."""
    d_model = params["wq"].shape[1]
    wmap_q = params["wmap"][0, :d_k]                   # (d_k,)
    wmap_k = params["wmap"][0, d_k:]                   # (d_k,)
    wq_h = params["wq"].reshape(n_head, d_k, d_model)
    wk_h = params["wk"].reshape(n_head, d_k, d_model)
    # fold_q[m, h] = sum_d Wq[h*d_k + d, m] * wmap_q[d]   (same for fold_k)
    fold_q = jnp.einsum("hdm,d->mh", wq_h, wmap_q)     # (d_model, n_head)
    fold_k = jnp.einsum("hdm,d->hm", wk_h, wmap_k)     # (n_head, d_model)
    return dict(
        fold_q=fold_q,
        fold_k=fold_k,
        wv_t=params["wv"].T.astype(COMPUTE_DTYPE),     # (d_model, n_head*d_v), bf16
        fc_wt=params["fc_w"].T.astype(COMPUTE_DTYPE),  # (n_head*d_v, d_model), bf16
        fc_b=params["fc_b"].reshape(1, -1),
        ln_g=params["ln_g"].reshape(1, -1),
        ln_b=params["ln_b"].reshape(1, -1),
    )


def map_based_mha_forward(prepared, q, k, v, mask, *, n_head, d_k, d_v):
    b, lq, d_model = q.shape
    lk = k.shape[1]
    cfg = _tpu_config()

    # Folded additive scores, precomputed as tiny XLA matmuls (removes d_model-wide q/k
    # DMA streams and two skinny MXU ops from the attention kernel).
    sq = jnp.einsum("bld,dh->blh", q, prepared["fold_q"])     # (b, lq, n_head)
    sk = jnp.einsum("hd,bld->bhl", prepared["fold_k"], k)     # (b, n_head, lk)

    mask_i8 = mask.astype(jnp.int8)    # 1 byte/elem, not n_head-tiled

    out_slab, attn_hb = map_attention(sq, sk, v, prepared["wv_t"], mask_i8,
                                      n_head=n_head, d_v=d_v, cfg=cfg)

    # Fused fc + LeakyReLU + residual + LayerNorm over flattened rows (free reshapes).
    out = fc_leaky_residual_layernorm(
        out_slab.reshape(b * lq, n_head * d_v), q.reshape(b * lq, d_model),
        prepared["fc_wt"], prepared["fc_b"], prepared["ln_g"], prepared["ln_b"],
        cfg=cfg).reshape(b, lq, d_model)

    # (n_head, b, lq, lk) -> (n_head*b, lq, lk): contiguous, zero-cost reshape that matches
    # the module's head-major attn layout.
    attn = attn_hb.reshape(n_head * b, lq, lk)
    return out, attn


# --------------------------------- pure-JAX reference ----------------------------------- #

def reference_forward(params, q, k, v, mask, *, n_head, d_k, d_v):
    """Mirrors the original PyTorch module math (explicit projections + concat-map score)."""
    b, lq, d_model = q.shape
    lk = k.shape[1]
    qp = (q @ params["wq"].T).reshape(b, lq, n_head, d_k)
    kp = (k @ params["wk"].T).reshape(b, lk, n_head, d_k)
    vp = (v @ params["wv"].T).reshape(b, lk, n_head, d_v)
    qh = jnp.transpose(qp, (2, 0, 1, 3)).reshape(n_head * b, lq, d_k)
    kh = jnp.transpose(kp, (2, 0, 1, 3)).reshape(n_head * b, lk, d_k)
    vh = jnp.transpose(vp, (2, 0, 1, 3)).reshape(n_head * b, lk, d_v)
    mask_nb = jnp.tile(mask, (n_head, 1, 1))

    sq = qh @ params["wmap"][0, :d_k]          # (nb, lq)
    sk = kh @ params["wmap"][0, d_k:]          # (nb, lk)
    scores = sq[:, :, None] + sk[:, None, :]   # (nb, lq, lk)
    scores = jnp.where(mask_nb, NEG_INF, scores)
    attn = jax.nn.softmax(scores, axis=-1)
    out = attn @ vh                            # (nb, lq, dv)
    out = out.reshape(n_head, b, lq, d_v)
    out = jnp.transpose(out, (1, 2, 0, 3)).reshape(b, lq, n_head * d_v)

    y = out @ params["fc_w"].T + params["fc_b"]
    y = jnp.where(y >= 0, y, LRELU_SLOPE * y)
    y = y + q
    mean = jnp.mean(y, axis=-1, keepdims=True)
    var = jnp.mean((y - mean) ** 2, axis=-1, keepdims=True)
    y = (y - mean) * jax.lax.rsqrt(var + LN_EPS)
    y = y * params["ln_g"] + params["ln_b"]
    return y, attn


# --------------------------------------- main ------------------------------------------- #

def init_params(key, n_head, d_model, d_k, d_v):
    ks = jax.random.split(key, 5)
    s = 0.1
    return dict(
        wq=jax.random.normal(ks[0], (n_head * d_k, d_model), jnp.float32) * s,
        wk=jax.random.normal(ks[1], (n_head * d_k, d_model), jnp.float32) * s,
        # The PyTorch module projects V with n_head*d_k (requires d_k == d_v); we use
        # n_head*d_v, which is identical here and correct in general.
        wv=jax.random.normal(ks[2], (n_head * d_v, d_model), jnp.float32) * s,
        fc_w=jax.random.normal(ks[3], (d_model, n_head * d_v), jnp.float32) * s,
        fc_b=jnp.zeros((d_model,), jnp.float32),
        wmap=jax.random.normal(ks[4], (1, 2 * d_k), jnp.float32) * s,
        ln_g=jnp.ones((d_model,), jnp.float32),
        ln_b=jnp.zeros((d_model,), jnp.float32),
    )


if __name__ == "__main__":
    n_head, d_model, d_k, d_v = 2, 32, 16, 16
    b, lq, lk = 2, 8, 8

    key = jax.random.PRNGKey(0)
    kq, kk, kv, km, kp = jax.random.split(key, 5)
    q = jax.random.normal(kq, (b, lq, d_model), jnp.float32)
    k = jax.random.normal(kk, (b, lk, d_model), jnp.float32)
    v = jax.random.normal(kv, (b, lk, d_model), jnp.float32)
    mask = jax.random.bernoulli(km, p=0.25, shape=(b, lq, lk))   # True => masked
    params = init_params(kp, n_head, d_model, d_k, d_v)
    prepared = prepare_params(params, n_head=n_head, d_k=d_k, d_v=d_v)

    fwd = jax.jit(functools.partial(map_based_mha_forward,
                                    n_head=n_head, d_k=d_k, d_v=d_v))
    out, attn = fwd(prepared, q, k, v, mask)
    out = jax.block_until_ready(out)
    attn = jax.block_until_ready(attn)

    ref_out, ref_attn = reference_forward(params, q, k, v, mask,
                                          n_head=n_head, d_k=d_k, d_v=d_v)
    # Tolerances account for the bf16 attention matrix / bf16 matmul operands (f32 MXU
    # accumulation); structural errors would be orders of magnitude larger.
    np.testing.assert_allclose(np.asarray(attn.astype(jnp.float32)), np.asarray(ref_attn),
                               atol=1e-2, rtol=1e-2)
    np.testing.assert_allclose(np.asarray(out), np.asarray(ref_out),
                               atol=2e-2, rtol=2e-2)

    print("KERNEL_OK")
</pallas_src>

<mosaic_0001>
module attributes {stable_mosaic.version = 11 : i64} {
  func.func @kernel(%arg0: i32, %arg1: i32, %arg2: memref<1x8x2xf32, #tpu.memory_space<vmem>>, %arg3: memref<1x2x8xf32, #tpu.memory_space<vmem>>, %arg4: memref<1x8x32xf32, #tpu.memory_space<vmem>>, %arg5: memref<32x32xbf16, #tpu.memory_space<vmem>>, %arg6: memref<1x8x8xi8, #tpu.memory_space<vmem>>, %arg7: memref<1x8x32xbf16, #tpu.memory_space<vmem>>, %arg8: memref<2x1x8x8xbf16, #tpu.memory_space<vmem>>, %arg9: memref<8x32xbf16, #tpu.memory_space<vmem>>) attributes {dimension_semantics = [#tpu.dimension_semantics<parallel>, #tpu.dimension_semantics<arbitrary>], iteration_bounds = array<i64: 2, 1>, scalar_prefetch = 0 : i64, scratch_operands = 1 : i64, tpu.core_type = #tpu.core_type<tc>, window_params = [{transform_indices = @transform_0, window_bounds = array<i64: 1, 8, 2>}, {transform_indices = @transform_1, window_bounds = array<i64: 1, 2, 8>}, {transform_indices = @transform_2, window_bounds = array<i64: 1, 8, 32>}, {pipeline_mode = #tpu.pipeline_mode<synchronous>, transform_indices = @transform_3, window_bounds = array<i64: 32, 32>}, {transform_indices = @transform_4, window_bounds = array<i64: 1, 8, 8>}, {transform_indices = @transform_5, window_bounds = array<i64: 1, 8, 32>}, {transform_indices = @transform_6, window_bounds = array<i64: 2, 1, 8, 8>}]} {
    %c0_i32 = arith.constant 0 : i32
    %0 = arith.cmpi eq, %arg1, %c0_i32 : i32
    %1 = arith.extui %0 : i1 to i32
    %c0_i32_0 = arith.constant 0 : i32
    %2 = arith.cmpi ne, %1, %c0_i32_0 : i32
    scf.if %2 {
      %c0_34 = arith.constant 0 : index
      %c0_35 = arith.constant 0 : index
      %c0_36 = arith.constant 0 : index
      %69 = vector.load %arg4[%c0_34, %c0_35, %c0_36] : memref<1x8x32xf32, #tpu.memory_space<vmem>>, vector<1x8x32xf32>
      %70 = vector.shape_cast %69 : vector<1x8x32xf32> to vector<8x32xf32>
      %71 = arith.truncf %70 : vector<8x32xf32> to vector<8x32xbf16>
      %c0_37 = arith.constant 0 : index
      %c0_38 = arith.constant 0 : index
      %72 = vector.load %arg5[%c0_37, %c0_38] : memref<32x32xbf16, #tpu.memory_space<vmem>>, vector<32x32xbf16>
      %cst_39 = arith.constant dense<0.000000e+00> : vector<8x32xf32>
      %73 = tpu.matmul %71, %72, %cst_39 {dimension_numbers = #tpu.dot_dimension_numbers<[1], [0], [0], [1], [0, 0, 1, 1], [], []>} : vector<8x32xbf16>, vector<32x32xbf16>, vector<8x32xf32> -> vector<8x32xf32>
      %74 = arith.truncf %73 : vector<8x32xf32> to vector<8x32xbf16>
      %c0_40 = arith.constant 0 : index
      %c0_41 = arith.constant 0 : index
      %75 = vector.load %arg9[%c0_40, %c0_41] : memref<8x32xbf16, #tpu.memory_space<vmem>>, vector<8x32xbf16>
      tpu.vector_store %arg9[%c0_40, %c0_41], %74 {strides = array<i32>} : memref<8x32xbf16, #tpu.memory_space<vmem>>, vector<8x32xbf16>,
    } else {
    }
    %c0 = arith.constant 0 : index
    %c0_1 = arith.constant 0 : index
    %c0_2 = arith.constant 0 : index
    %3 = vector.load %arg2[%c0, %c0_1, %c0_2] : memref<1x8x2xf32, #tpu.memory_space<vmem>>, vector<1x8x2xf32>
    %4 = vector.shape_cast %3 : vector<1x8x2xf32> to vector<8x2xf32>
    %c0_3 = arith.constant 0 : index
    %c0_4 = arith.constant 0 : index
    %c0_5 = arith.constant 0 : index
    %5 = vector.load %arg3[%c0_3, %c0_4, %c0_5] : memref<1x2x8xf32, #tpu.memory_space<vmem>>, vector<1x2x8xf32>
    %6 = vector.shape_cast %5 : vector<1x2x8xf32> to vector<2x8xf32>
    %c0_6 = arith.constant 0 : index
    %c0_7 = arith.constant 0 : index
    %c0_8 = arith.constant 0 : index
    %7 = vector.load %arg6[%c0_6, %c0_7, %c0_8] : memref<1x8x8xi8, #tpu.memory_space<vmem>>, vector<1x8x8xi8>
    %8 = vector.shape_cast %7 : vector<1x8x8xi8> to vector<8x8xi8>
    %c0_i8 = arith.constant 0 : i8
    %9 = vector.broadcast %c0_i8 : i8 to vector<8x8xi8>
    %10 = arith.cmpi ne, %8, %9 : vector<8x8xi8>
    %11 = vector.extract_strided_slice %4 {offsets = [0, 0], sizes = [8, 1], strides = [1, 1]} : vector<8x2xf32> to vector<8x1xf32>
    %12 = vector.extract_strided_slice %6 {offsets = [0, 0], sizes = [1, 8], strides = [1, 1]} : vector<2x8xf32> to vector<1x8xf32>
    %13 = vector.broadcast %11 : vector<8x1xf32> to vector<8x8xf32>
    %14 = vector.broadcast %12 : vector<1x8xf32> to vector<8x8xf32>
    %15 = arith.addf %13, %14 : vector<8x8xf32>
    %cst = arith.constant -1.000000e+10 : f32
    %16 = vector.broadcast %cst : f32 to vector<8x8xf32>
    %17 = arith.select %10, %16, %15 : vector<8x8xi1>, vector<8x8xf32>
    %cst_9 = arith.constant dense<0xFF800000> : vector<8xf32>
    %18 = vector.multi_reduction <maximumf>, %17, %cst_9 [1] : vector<8x8xf32> to vector<8xf32>
    %19 = vector.shape_cast %18 : vector<8xf32> to vector<8x1xf32>
    %20 = vector.broadcast %19 : vector<8x1xf32> to vector<8x8xf32>
    %21 = arith.subf %17, %20 : vector<8x8xf32>
    %22 = math.exp %21 : vector<8x8xf32>
    %cst_10 = arith.constant dense<0.000000e+00> : vector<8xf32>
    %23 = vector.multi_reduction <add>, %22, %cst_10 [1] : vector<8x8xf32> to vector<8xf32>
    %24 = vector.shape_cast %23 : vector<8xf32> to vector<8x1xf32>
    %cst_11 = arith.constant 1.000000e+00 : f32
    %25 = vector.broadcast %cst_11 : f32 to vector<8x1xf32>
    %26 = arith.divf %25, %24 : vector<8x1xf32>
    %27 = vector.broadcast %26 : vector<8x1xf32> to vector<8x8xf32>
    %28 = arith.mulf %22, %27 : vector<8x8xf32>
    %29 = arith.truncf %28 : vector<8x8xf32> to vector<8x8xbf16>
    %c0_12 = arith.constant 0 : index
    %c0_13 = arith.constant 0 : index
    %c0_14 = arith.constant 0 : index
    %c0_15 = arith.constant 0 : index
    %30 = vector.load %arg8[%c0_12, %c0_13, %c0_14, %c0_15] : memref<2x1x8x8xbf16, #tpu.memory_space<vmem>>, vector<1x1x8x8xbf16>
    %31 = vector.shape_cast %30 : vector<1x1x8x8xbf16> to vector<8x8xbf16>
    %32 = vector.shape_cast %29 : vector<8x8xbf16> to vector<1x1x8x8xbf16>
    tpu.vector_store %arg8[%c0_12, %c0_13, %c0_14, %c0_15], %32 {strides = array<i32>} : memref<2x1x8x8xbf16, #tpu.memory_space<vmem>>, vector<1x1x8x8xbf16>,
    %33 = arith.truncf %28 : vector<8x8xf32> to vector<8x8xbf16>
    %c0_16 = arith.constant 0 : index
    %c0_17 = arith.constant 0 : index
    %34 = vector.load %arg9[%c0_16, %c0_17] : memref<8x32xbf16, #tpu.memory_space<vmem>>, vector<8x16xbf16>
    %cst_18 = arith.constant dense<0.000000e+00> : vector<8x16xf32>
    %35 = tpu.matmul %33, %34, %cst_18 {dimension_numbers = #tpu.dot_dimension_numbers<[1], [0], [0], [1], [0, 0, 1, 1], [], []>} : vector<8x8xbf16>, vector<8x16xbf16>, vector<8x16xf32> -> vector<8x16xf32>
    %36 = arith.truncf %35 : vector<8x16xf32> to vector<8x16xbf16>
    %c0_19 = arith.constant 0 : index
    %c0_20 = arith.constant 0 : index
    %c0_21 = arith.constant 0 : index
    %37 = vector.load %arg7[%c0_19, %c0_20, %c0_21] : memref<1x8x32xbf16, #tpu.memory_space<vmem>>, vector<1x8x16xbf16>
    %38 = vector.shape_cast %37 : vector<1x8x16xbf16> to vector<8x16xbf16>
    %39 = vector.shape_cast %36 : vector<8x16xbf16> to vector<1x8x16xbf16>
    tpu.vector_store %arg7[%c0_19, %c0_20, %c0_21], %39 {strides = array<i32>} : memref<1x8x32xbf16, #tpu.memory_space<vmem>>, vector<1x8x16xbf16>,
    %40 = vector.extract_strided_slice %4 {offsets = [0, 1], sizes = [8, 1], strides = [1, 1]} : vector<8x2xf32> to vector<8x1xf32>
    %41 = vector.extract_strided_slice %6 {offsets = [1, 0], sizes = [1, 8], strides = [1, 1]} : vector<2x8xf32> to vector<1x8xf32>
    %42 = vector.broadcast %40 : vector<8x1xf32> to vector<8x8xf32>
    %43 = vector.broadcast %41 : vector<1x8xf32> to vector<8x8xf32>
    %44 = arith.addf %42, %43 : vector<8x8xf32>
    %cst_22 = arith.constant -1.000000e+10 : f32
    %45 = vector.broadcast %cst_22 : f32 to vector<8x8xf32>
    %46 = arith.select %10, %45, %44 : vector<8x8xi1>, vector<8x8xf32>
    %cst_23 = arith.constant dense<0xFF800000> : vector<8xf32>
    %47 = vector.multi_reduction <maximumf>, %46, %cst_23 [1] : vector<8x8xf32> to vector<8xf32>
    %48 = vector.shape_cast %47 : vector<8xf32> to vector<8x1xf32>
    %49 = vector.broadcast %48 : vector<8x1xf32> to vector<8x8xf32>
    %50 = arith.subf %46, %49 : vector<8x8xf32>
    %51 = math.exp %50 : vector<8x8xf32>
    %cst_24 = arith.constant dense<0.000000e+00> : vector<8xf32>
    %52 = vector.multi_reduction <add>, %51, %cst_24 [1] : vector<8x8xf32> to vector<8xf32>
    %53 = vector.shape_cast %52 : vector<8xf32> to vector<8x1xf32>
    %cst_25 = arith.constant 1.000000e+00 : f32
    %54 = vector.broadcast %cst_25 : f32 to vector<8x1xf32>
    %55 = arith.divf %54, %53 : vector<8x1xf32>
    %56 = vector.broadcast %55 : vector<8x1xf32> to vector<8x8xf32>
    %57 = arith.mulf %51, %56 : vector<8x8xf32>
    %58 = arith.truncf %57 : vector<8x8xf32> to vector<8x8xbf16>
    %c1 = arith.constant 1 : index
    %c0_26 = arith.constant 0 : index
    %c0_27 = arith.constant 0 : index
    %c0_28 = arith.constant 0 : index
    %59 = vector.load %arg8[%c1, %c0_26, %c0_27, %c0_28] : memref<2x1x8x8xbf16, #tpu.memory_space<vmem>>, vector<1x1x8x8xbf16>
    %60 = vector.shape_cast %59 : vector<1x1x8x8xbf16> to vector<8x8xbf16>
    %61 = vector.shape_cast %58 : vector<8x8xbf16> to vector<1x1x8x8xbf16>
    tpu.vector_store %arg8[%c1, %c0_26, %c0_27, %c0_28], %61 {strides = array<i32>} : memref<2x1x8x8xbf16, #tpu.memory_space<vmem>>, vector<1x1x8x8xbf16>,
    %62 = arith.truncf %57 : vector<8x8xf32> to vector<8x8xbf16>
    %c0_29 = arith.constant 0 : index
    %c16 = arith.constant 16 : index
    %63 = vector.load %arg9[%c0_29, %c16] : memref<8x32xbf16, #tpu.memory_space<vmem>>, vector<8x16xbf16>
    %cst_30 = arith.constant dense<0.000000e+00> : vector<8x16xf32>
    %64 = tpu.matmul %62, %63, %cst_30 {dimension_numbers = #tpu.dot_dimension_numbers<[1], [0], [0], [1], [0, 0, 1, 1], [], []>} : vector<8x8xbf16>, vector<8x16xbf16>, vector<8x16xf32> -> vector<8x16xf32>
    %65 = arith.truncf %64 : vector<8x16xf32> to vector<8x16xbf16>
    %c0_31 = arith.constant 0 : index
    %c0_32 = arith.constant 0 : index
    %c16_33 = arith.constant 16 : index
    %66 = vector.load %arg7[%c0_31, %c0_32, %c16_33] : memref<1x8x32xbf16, #tpu.memory_space<vmem>>, vector<1x8x16xbf16>
    %67 = vector.shape_cast %66 : vector<1x8x16xbf16> to vector<8x16xbf16>
    %68 = vector.shape_cast %65 : vector<8x16xbf16> to vector<1x8x16xbf16>
    tpu.vector_store %arg7[%c0_31, %c0_32, %c16_33], %68 {strides = array<i32>} : memref<1x8x32xbf16, #tpu.memory_space<vmem>>, vector<1x8x16xbf16>,
    return
  }
  func.func @transform_0(%arg0: i32, %arg1: i32) -> (i32, i32, i32) {
    %c0_i32 = arith.constant 0 : i32
    %c0_i32_0 = arith.constant 0 : i32
    return %arg0, %arg1, %c0_i32 : i32, i32, i32
  }
  func.func @transform_1(%arg0: i32, %arg1: i32) -> (i32, i32, i32) {
    %c0_i32 = arith.constant 0 : i32
    %c0_i32_0 = arith.constant 0 : i32
    %c0_i32_1 = arith.constant 0 : i32
    return %arg0, %c0_i32, %c0_i32_0 : i32, i32, i32
  }
  func.func @transform_2(%arg0: i32, %arg1: i32) -> (i32, i32, i32) {
    %c0_i32 = arith.constant 0 : i32
    %c0_i32_0 = arith.constant 0 : i32
    %c0_i32_1 = arith.constant 0 : i32
    return %arg0, %c0_i32, %c0_i32_0 : i32, i32, i32
  }
  func.func @transform_3(%arg0: i32, %arg1: i32) -> (i32, i32) {
    %c0_i32 = arith.constant 0 : i32
    %c0_i32_0 = arith.constant 0 : i32
    %c0_i32_1 = arith.constant 0 : i32
    return %c0_i32, %c0_i32_0 : i32, i32
  }
  func.func @transform_4(%arg0: i32, %arg1: i32) -> (i32, i32, i32) {
    %c0_i32 = arith.constant 0 : i32
    %c0_i32_0 = arith.constant 0 : i32
    return %arg0, %arg1, %c0_i32 : i32, i32, i32
  }
  func.func @transform_5(%arg0: i32, %arg1: i32) -> (i32, i32, i32) {
    %c0_i32 = arith.constant 0 : i32
    %c0_i32_0 = arith.constant 0 : i32
    return %arg0, %arg1, %c0_i32 : i32, i32, i32
  }
  func.func @transform_6(%arg0: i32, %arg1: i32) -> (i32, i32, i32, i32) {
    %c0_i32 = arith.constant 0 : i32
    %c0_i32_0 = arith.constant 0 : i32
    %c0_i32_1 = arith.constant 0 : i32
    return %c0_i32, %arg0, %arg1, %c0_i32_0 : i32, i32, i32, i32
  }
}

module attributes {stable_mosaic.version = 11 : i64} {
  func.func @_fc_ln_kernel(%arg0: i32, %arg1: memref<16x32xbf16, #tpu.memory_space<vmem>>, %arg2: memref<16x32xf32, #tpu.memory_space<vmem>>, %arg3: memref<32x32xbf16, #tpu.memory_space<vmem>>, %arg4: memref<1x32xf32, #tpu.memory_space<vmem>>, %arg5: memref<1x32xf32, #tpu.memory_space<vmem>>, %arg6: memref<1x32xf32, #tpu.memory_space<vmem>>, %arg7: memref<16x32xf32, #tpu.memory_space<vmem>>) attributes {dimension_semantics = [#tpu.dimension_semantics<parallel>], iteration_bounds = array<i64: 1>, scalar_prefetch = 0 : i64, scratch_operands = 0 : i64, tpu.core_type = #tpu.core_type<tc>, window_params = [{transform_indices = @transform_0, window_bounds = array<i64: 16, 32>}, {transform_indices = @transform_1, window_bounds = array<i64: 16, 32>}, {pipeline_mode = #tpu.pipeline_mode<synchronous>, transform_indices = @transform_2, window_bounds = array<i64: 32, 32>}, {pipeline_mode = #tpu.pipeline_mode<synchronous>, transform_indices = @transform_3, window_bounds = array<i64: 1, 32>}, {pipeline_mode = #tpu.pipeline_mode<synchronous>, transform_indices = @transform_4, window_bounds = array<i64: 1, 32>}, {pipeline_mode = #tpu.pipeline_mode<synchronous>, transform_indices = @transform_5, window_bounds = array<i64: 1, 32>}, {transform_indices = @transform_6, window_bounds = array<i64: 16, 32>}]} {
    %c0 = arith.constant 0 : index
    %c0_0 = arith.constant 0 : index
    %0 = vector.load %arg1[%c0, %c0_0] : memref<16x32xbf16, #tpu.memory_space<vmem>>, vector<16x32xbf16>
    %c0_1 = arith.constant 0 : index
    %c0_2 = arith.constant 0 : index
    %1 = vector.load %arg3[%c0_1, %c0_2] : memref<32x32xbf16, #tpu.memory_space<vmem>>, vector<32x32xbf16>
    %cst = arith.constant dense<0.000000e+00> : vector<16x32xf32>
    %2 = tpu.matmul %0, %1, %cst {dimension_numbers = #tpu.dot_dimension_numbers<[1], [0], [0], [1], [0, 0, 1, 1], [], []>} : vector<16x32xbf16>, vector<32x32xbf16>, vector<16x32xf32> -> vector<16x32xf32>
    %c0_3 = arith.constant 0 : index
    %c0_4 = arith.constant 0 : index
    %3 = vector.load %arg4[%c0_3, %c0_4] : memref<1x32xf32, #tpu.memory_space<vmem>>, vector<1x32xf32>
    %4 = vector.broadcast %3 : vector<1x32xf32> to vector<16x32xf32>
    %5 = arith.addf %2, %4 : vector<16x32xf32>
    %cst_5 = arith.constant 0.000000e+00 : f32
    %6 = vector.broadcast %cst_5 : f32 to vector<16x32xf32>
    %7 = arith.cmpf oge, %5, %6 : vector<16x32xf32>
    %cst_6 = arith.constant 2.000000e-01 : f32
    %8 = vector.broadcast %cst_6 : f32 to vector<16x32xf32>
    %9 = arith.mulf %8, %5 : vector<16x32xf32>
    %10 = arith.select %7, %5, %9 : vector<16x32xi1>, vector<16x32xf32>
    %c0_7 = arith.constant 0 : index
    %c0_8 = arith.constant 0 : index
    %11 = vector.load %arg2[%c0_7, %c0_8] : memref<16x32xf32, #tpu.memory_space<vmem>>, vector<16x32xf32>
    %12 = arith.addf %10, %11 : vector<16x32xf32>
    %cst_9 = arith.constant dense<0.000000e+00> : vector<16xf32>
    %13 = vector.multi_reduction <add>, %12, %cst_9 [1] : vector<16x32xf32> to vector<16xf32>
    %14 = vector.shape_cast %13 : vector<16xf32> to vector<16x1xf32>
    %cst_10 = arith.constant 3.200000e+01 : f32
    %15 = vector.broadcast %cst_10 : f32 to vector<16x1xf32>
    %16 = arith.divf %14, %15 : vector<16x1xf32>
    %17 = vector.broadcast %16 : vector<16x1xf32> to vector<16x32xf32>
    %18 = arith.subf %12, %17 : vector<16x32xf32>
    %19 = arith.mulf %18, %18 : vector<16x32xf32>
    %cst_11 = arith.constant dense<0.000000e+00> : vector<16xf32>
    %20 = vector.multi_reduction <add>, %19, %cst_11 [1] : vector<16x32xf32> to vector<16xf32>
    %21 = vector.shape_cast %20 : vector<16xf32> to vector<16x1xf32>
    %cst_12 = arith.constant 3.200000e+01 : f32
    %22 = vector.broadcast %cst_12 : f32 to vector<16x1xf32>
    %23 = arith.divf %21, %22 : vector<16x1xf32>
    %24 = vector.broadcast %16 : vector<16x1xf32> to vector<16x32xf32>
    %25 = arith.subf %12, %24 : vector<16x32xf32>
    %cst_13 = arith.constant 9.99999974E-6 : f32
    %26 = vector.broadcast %cst_13 : f32 to vector<16x1xf32>
    %27 = arith.addf %23, %26 : vector<16x1xf32>
    %28 = math.rsqrt %27 : vector<16x1xf32>
    %29 = vector.broadcast %28 : vector<16x1xf32> to vector<16x32xf32>
    %30 = arith.mulf %25, %29 : vector<16x32xf32>
    %c0_14 = arith.constant 0 : index
    %c0_15 = arith.constant 0 : index
    %31 = vector.load %arg5[%c0_14, %c0_15] : memref<1x32xf32, #tpu.memory_space<vmem>>, vector<1x32xf32>
    %32 = vector.broadcast %31 : vector<1x32xf32> to vector<16x32xf32>
    %33 = arith.mulf %30, %32 : vector<16x32xf32>
    %c0_16 = arith.constant 0 : index
    %c0_17 = arith.constant 0 : index
    %34 = vector.load %arg6[%c0_16, %c0_17] : memref<1x32xf32, #tpu.memory_space<vmem>>, vector<1x32xf32>
    %35 = vector.broadcast %34 : vector<1x32xf32> to vector<16x32xf32>
    %36 = arith.addf %33, %35 : vector<16x32xf32>
    %c0_18 = arith.constant 0 : index
    %c0_19 = arith.constant 0 : index
    %37 = vector.load %arg7[%c0_18, %c0_19] : memref<16x32xf32, #tpu.memory_space<vmem>>, vector<16x32xf32>
    tpu.vector_store %arg7[%c0_18, %c0_19], %36 {strides = array<i32>} : memref<16x32xf32, #tpu.memory_space<vmem>>, vector<16x32xf32>,
    return
  }
  func.func @transform_0(%arg0: i32) -> (i32, i32) {
    %c0_i32 = arith.constant 0 : i32
    %c0_i32_0 = arith.constant 0 : i32
    return %arg0, %c0_i32 : i32, i32
  }
  func.func @transform_1(%arg0: i32) -> (i32, i32) {
    %c0_i32 = arith.constant 0 : i32
    %c0_i32_0 = arith.constant 0 : i32
    return %arg0, %c0_i32 : i32, i32
  }
  func.func @transform_2(%arg0: i32) -> (i32, i32) {
    %c0_i32 = arith.constant 0 : i32
    %c0_i32_0 = arith.constant 0 : i32
    %c0_i32_1 = arith.constant 0 : i32
    return %c0_i32, %c0_i32_0 : i32, i32
  }
  func.func @transform_3(%arg0: i32) -> (i32, i32) {
    %c0_i32 = arith.constant 0 : i32
    %c0_i32_0 = arith.constant 0 : i32
    %c0_i32_1 = arith.constant 0 : i32
    return %c0_i32, %c0_i32_0 : i32, i32
  }
  func.func @transform_4(%arg0: i32) -> (i32, i32) {
    %c0_i32 = arith.constant 0 : i32
    %c0_i32_0 = arith.constant 0 : i32
    %c0_i32_1 = arith.constant 0 : i32
    return %c0_i32, %c0_i32_0 : i32, i32
  }
  func.func @transform_5(%arg0: i32) -> (i32, i32) {
    %c0_i32 = arith.constant 0 : i32
    %c0_i32_0 = arith.constant 0 : i32
    %c0_i32_1 = arith.constant 0 : i32
    return %c0_i32, %c0_i32_0 : i32, i32
  }
  func.func @transform_6(%arg0: i32) -> (i32, i32) {
    %c0_i32 = arith.constant 0 : i32
    %c0_i32_0 = arith.constant 0 : i32
    return %arg0, %c0_i32 : i32, i32
  }
}

</mosaic_0001>

<bundles_post_ra>
// kernel: map_based_mha_forward.2
= control target key start
LH: loop header
LB: loop body
LE: loop exit
PB: predicated region body
PF: predicated region fallthrough
CT: control target
= control target key end

     0   :  { %12 = vsyncpa [#allocation4], 0  ;;  %s1175_s0 = inlined_call_operand.vmem [shape: f32[2,8,2], index: 0, kind: input, shape index: {}]   ;;  %s1176_s1 = inlined_call_operand.vmem [shape: f32[2,2,8], index: 1, kind: input, shape index: {}]   ;;  %s1177_s2 = inlined_call_operand.vmem [shape: f32[2,8,32], index: 2, kind: input, shape index: {}]   ;;  %s1178_s3 = inlined_call_operand.vmem [shape: bf16[32,32], index: 3, kind: input, shape index: {}]   ;;  %s1179_s4 = inlined_call_operand.vmem [shape: s8[2,8,8], index: 4, kind: input, shape index: {}]   ;;  %s1180_s5 = inlined_call_operand.vmem [shape: bf16[2,8,32], index: 5, kind: output, shape index: {0}]   ;;  %s1181_s6 = inlined_call_operand.hbm [shape: bf16[2,2,8,8], index: 6, kind: output, shape index: {1}]  }
   0x1   :  { %14 = vsyncpa [#allocation4 + $0x1], 0  ;;  %s1015_s21 = smov 0   ;;  %s1017_s22 = smov 0  }
   0x2   :  { %s1019_s23 = smov 0   ;;  %s1021_s24 = smov 0  }
   0x3   :  { %s1023_s25 = smov 0   ;;  %s1025_s26 = smov 0  }
   0x4 LB: > { %s764_s27 = sadd.s32 4294967295, %s968_s26   ;;  %s765_s28 = sadd.s32 4294967294, %s968_s26   ;;  %s968_s26 = sphi %s1025_s26, %s20_s26   ;;  %s964_s25 = sphi %s1023_s25, %s1188_s25   ;;  %s960_s24 = sphi %s1021_s24, %s1187_s24   ;;  %s956_s23 = sphi %s1019_s23, %s1186_s23   ;;  %s952_s22 = sphi %s1017_s22, %s1185_s22   ;;  %s948_s21 = sphi %s1015_s21, %s1184_s21  }
   0x5   : > { %s32_s29 = sadd.s32 1, %s964_s25  ;;  %s198_s30 = sadd.s32 1, %s956_s23 }
   0x6   : > { %p34_p0 = scmp.ge.s32.totalorder %s32_s29, 2  ;;  %p208_p1 = scmp.ne.s32.totalorder %s956_s23, %s952_s22 }
   0x7   : > { %p209_p2 = scmp.eq.s32.totalorder %s764_s27, 1  ;;  %p214_p3 = scmp.ne.s32.totalorder %s952_s22, %s948_s21 }
   0x8   : > { %s1190_s29 = smov (%p34_p0, %s32_s29), 0  ;;  %p215_p5 = scmp.eq.s32.totalorder %s765_s28, 1 }
   0x9   : > { %p1055_p4 = por %p209_p2, %p208_p1  ;;  %s193_s8 = ssub.s32 %s964_s25, %s1190_s29 }
   0xa   : > { %p768_p6 = scmp.ge.s32.totalorder %s968_s26, 1  ;;  %p196_p7 = scmp.eq.s32.totalorder %s193_s8, 0 }
   0xb   : > { %p1062_p8 = por %p215_p5, %p214_p3  ;;  %p270_p9 = scmp.lt.s32.totalorder %s968_s26, 3 }
   0xc   : > { %s1068_s10 = scalar_select %p196_p7, %s956_s23, %s198_s30  }
   0xd   : > { %p271_p10 = pnand %p768_p6, %p270_p9 }
   0xe   : > { %p324_p11 = scmp.lt.s32.totalorder (!%p271_p10), %s960_s24, 1  ;;  %s974_s17 = smov (!%p271_p10), 112  }
   0xf   : > { %274 = sbr.rel (%p271_p10) target bundleno = 795 (0x31b), region = 40  ;;  %s321_s18 = sand.u32 (!%p271_p10), 1, %s952_s22  }
  0x10   : > { %s784_s11 = sshll.u32 (!%p271_p10), %s960_s24, 6 }
  0x14   : > { %v970_v0 = vmov 0   ;;  %v971_v1 = vmov 0.0   ;;  %v881_v2 = vld [vmem:[%s1178_s3 + $0x8] sm:$0xff]   ;;  %s1076_s13 = scalar_select %p324_p11, %s960_s24, 1  ;;  %vm972_vm0 = vmmov 0   ;;  %v882_v3 = vld [vmem:[%s1178_s3] sm:$0xff]   ;;  %v434_v8 = vlaneseq }
  0x15   : > { %879 = vset.pattern.permute.xlu0 %v970_v0  ;;  %795 = vmatprep.subr.bf16.mxu0 %v971_v1  ;;  %vm378_vm1 = vcmask 261120   ;;  %v973_v7 = vmov 1   ;;  %vm443_vm4 = vcmask 64512   ;;  %vm423_vm5 = vcmask 257024   ;;  %s975_s24 = smov [#allocation3]  }
  0x16   : > { %799 = vmatprep.mubr.msk.bf16.mxu0 %vm972_vm0, %v971_v1  ;;  %803 = vmatprep.subr.bf16.mxu1 %v971_v1  ;;  %s770_s16 = sshll.u32 %s1076_s13, 3  ;;  %s771_s30 = sshll.u32 %s1076_s13, 1  ;;  %v435_v10 = vshrl.u32 %v434_v8, 7  ;;  %vm463_vm6 = vcmask 1043456   ;;  %vm457_vm7 = vcmask 60416   ;;  %vm508_vm8 = vcmask 125952  }
  0x17   : > { %796 = vmatpush3.bf16.msra.mxu0 %v881_v2  ;;  %805 = vmatprep.mubr.msk.bf16.mxu1 %vm972_vm0, %v971_v1  ;;  %s330_s19 = scalar_lea.vmem %s1175_s0, %s770_s16  ;;  %s338_s28 = scalar_lea.vmem %s1177_s2, %s770_s16 }
  0x18   : > { %797 = vmatprep.subr.bf16.mxu0 %v971_v1  ;;  %v425_v4 = vld [vmem:[%s330_s19] sm:$0xff]  ;;  %s345_s12 = scalar_lea.vmem %s1179_s4, %s771_s30  ;;  %s334_s16 = scalar_lea.vmem %s1176_s1, %s771_s30  ;;  %v436_v12 = vsub.s32 0, %v435_v10  ;;  %v516_v16 = vsub.s32 1, %v435_v10 }
  0x19   : > { %v360_v5 = vld [vmem:[%s338_s28] sm:$0xff]  ;;  %431 = vperm.xlu0 %879, %v425_v4   ;;  %s769_s19 = sshll.u32 %s321_s18, 3  ;;  %s774_s27 = sshll.u32 %s1076_s13, 2 }
  0x1a   : > { %v361_v6 = vpack.c.bf16 %v360_v5, %v360_v5  ;;  %v427_v9 = vld [vmem:[%s345_s12] sm:$0x3]  ;;  %s323_s20 = scalar_lea.vmem [#allocation3], %s769_s19  ;;  %s1117_s8 = scalar_lea.vmem %s1180_s5, %s774_s27 }
  0x1b   : > { %798 = vmatpush3.bf16.msra.mxu0 %v882_v3  ;;  %vm428_vm2 = vnez %v427_v9  ;;  %v426_v13 = vld [vmem:[%s334_s16] sm:$0x3]  ;;  %s620_s12 = sshll.u32 %s323_s20, 4  ;;  %s1123_s16 = scalar_lea.hbm %s1181_s6, %s784_s11  ;;  %s1125_s12 = int_to_ptr.vmem [resolvable:$true] %s620_s12 }
  0x1c   : > { %v439_v11 = vsel %vm428_vm2, 16843009, %v970_v0  ;;  %v437_v15 = vrot.slane %v426_v13, %v436_v12  ;;  %v517_v19 = vrot.slane %v426_v13, %v516_v16  ;;  %s1127_s13 = scalar_lea.sflag [#allocation4], %s321_s18  ;;  %s896_s19 = sshll.u32 %s975_s24, 4  ;;  %s897_s19 = int_to_ptr.vmem [resolvable:$false] %s896_s19 }
  0x1d   : > { %880 = vset.pattern.permute.xlu0 %v973_v7  ;;  %v440_v14 = vunpack.c.0.s8 %v439_v11  ;;  %p899_p1 = scmp.lt.s32.totalorder %s1125_s12, %s897_s19 }
  0x1e   : > { %800 = vmatmul.mubr.msk.bf16.vlgmr.msra.gmra.mxu0 %vm378_vm1, %v361_v6  ;;  %511 = vperm.xlu0 %880, %v425_v4  }
  0x1f   : > { %vm441_vm3 = vcmp.ne.s32.totalorder %v440_v14, 0 }
  0x94   : > { %v432_v17 = vpop.permute.xlu0 %431 }
  0x95   : > { %v438_v18 = vadd.f32 %v437_v15, %v432_v17 }
  0x97   : > { %v442_v20 = vsel %vm441_vm3, -1e+10, %v438_v18 }
  0x98   : > { %v444_v21 = vsel %vm443_vm4, %v442_v20, -inf }
  0x99   : > { %445 = vmax.xlane.f32.xlu1 %v444_v21  ;;  %v512_v22 = vpop.permute.xlu0 %511 }
  0x9a   : > { %v518_v23 = vadd.f32 %v517_v19, %v512_v22 }
  0x9c   : > { %v519_v24 = vsel %vm441_vm3, -1e+10, %v518_v23 }
  0x9d   : > { %v520_v25 = vsel %vm443_vm4, %v519_v24, -inf }
  0x9e   : > { %521 = vmax.xlane.f32.xlu1 %v520_v25 }
  0xde   : > { %v416_v26 = vpop.f32.mrf.mxu0 }
  0xdf   : > { %v422_v27 = vpack.c.bf16 %v416_v26, %v416_v26 }
  0xe0   : > { %v801_v28 = vpop.f32.mrf.mxu0 }
  0xe1   : > { %424 = vst.msk [vmem:[#allocation2] sm:$0xf] %vm423_vm5, %v422_v27 }
  0xe2   : > { %v419_v29 = vpop.f32.mrf.mxu0 }
  0xe4   : > { %v802_v30 = vpop.f32.mrf.mxu0 }
  0xe8   : > { %v459_v31 = vld [vmem:[#allocation2] sm:$0xf] }
  0xe9   : > { %v465_v32 = vsel %vm463_vm6, %v459_v31, 0  ;;  %v883_v43 = vld [vmem:[#allocation2] ss:$0 sps:$4 sm:$0xff]  }
  0xea   : > { %804 = vmatpush3.bf16.msra.mxu1 %v465_v32 }
  0xeb   : > { %809 = vmatprep.subr.bf16.mxu1 %v971_v1 }
 0x122   : > { %v446_v33 = vpop.xlane.xlu1 %445 }
 0x123   : > { %v447_v34 = vsub.f32 %v442_v20, %v446_v33 }
 0x125   : > { %v448_v35 = vmul.f32 1.442695, %v447_v34 }
 0x127   : > { %884 = vpow2.f32 %v448_v35  ;;  %v522_v36 = vpop.xlane.xlu1 %521 }
 0x128   : > { %v523_v37 = vsub.f32 %v519_v24, %v522_v36 }
 0x12a   : > { %v524_v38 = vmul.f32 1.442695, %v523_v37 }
 0x12c   : > { %886 = vpow2.f32 %v524_v38 }
 0x134   : > { %v885_v39 = vpop.eup %884 }
 0x135   : > { %v450_v40 = vsel %vm443_vm4, %v885_v39, 0.0 }
 0x136   : > { %451 = vadd.xlane.f32.xlu1 %v450_v40 }
 0x139   : > { %v887_v41 = vpop.eup %886 }
 0x13a   : > { %v526_v42 = vsel %vm443_vm4, %v887_v41, 0.0 }
 0x13b   : > { %527 = vadd.xlane.f32.xlu0 %v526_v42 }
 0x147   : > { %539 = vrot.lane.b32.xlu1 %v883_v43, %s974_s17  ;;  %s892_s17 = scalar_lea.vmem %s1125_s12, 128 }
 0x148   : > { %p893_p12 = scmp.ne.s32.totalorder %s1125_s12, %s892_s17 }
 0x14a   : > { %p894_p13 = pnand %p893_p12, %p1055_p4 }
 0x14c   : > { %p895_p0 = pneg %p894_p13 }
 0x1bf   : > { %v452_v44 = vpop.xlane.xlu1 %451 }
 0x1c0   : > { %888 = vrcp.f32 %v452_v44 }
 0x1c3   : > { %v540_v47 = vpop.permute.xlu1 %539 }
 0x1c4   : > { %v528_v45 = vpop.xlane.xlu0 %527  ;;  %v545_v49 = vsel %vm463_vm6, %v540_v47, 0 }
 0x1c5   : > { %890 = vrcp.f32 %v528_v45 }
 0x1cd   : > { %v889_v46 = vpop.eup %888 }
 0x1ce   : > { %v455_v48 = vmul.f32 %v889_v46, %v885_v39 }
 0x1d0   : > { %v456_v50 = vpack.c.bf16 %v455_v48, %v455_v48 }
 0x1d2   : > { %v891_v51 = vpop.eup %890  ;;  %458 = vst.msk [vmem:[%s323_s20] sm:$0xf] %vm457_vm7, %v456_v50  ;;  %806 = vmatmul.mubr.msk.bf16.vlgmr.msra.gmra.mxu1 %vm443_vm4, %v456_v50 }
 0x1d3   : > { %810 = vmatpush3.bf16.msra.mxu1 %v545_v49  ;;  %811 = vmatprep.mubr.msk.bf16.mxu1 %vm972_vm0, %v971_v1  ;;  %v531_v52 = vmul.f32 %v891_v51, %v887_v41 }
 0x1d5   : > { %v532_v53 = vpack.c.bf16 %v531_v52, %v531_v52 }
 0x1d7   : > { %779 = vst.msk [vmem:[%s323_s20 + $0x4] sm:$0xf] %vm457_vm7, %v532_v53  ;;  %s898_s20 = scalar_lea.vmem %s897_s19, 256 }
 0x1d8   : > { %p900_p2 = scmp.lt.s32.totalorder %s898_s20, %s892_s17 }
 0x1da   : > { %812 = vmatmul.mubr.msk.bf16.vlgmr.msra.gmra.mxu1 %vm443_vm4, %v532_v53  ;;  %p901_p3 = por %p900_p2, %p899_p1 }
 0x1dc   : > { %p902_p5 = pnand %p901_p3, %p895_p0 }
 0x292   : > { %v501_v54 = vpop.f32.mrf.mxu1 }
 0x293   : > { %905 = shalt.err (!%p902_p5)
}
 0x294   : > { %s906_s18 = scalar_lea.hbm %s1123_s16, 128  ;;  %s910_s30 = scalar_lea.hbm %s1181_s6, 256 }
 0x295   : > { %p907_p6 = scmp.ne.s32.totalorder %s1123_s16, %s906_s18  ;;  %p911_p10 = scmp.lt.s32.totalorder %s1123_s16, %s1181_s6 }
 0x296   : > { %p912_p11 = scmp.lt.s32.totalorder %s910_s30, %s906_s18 }
 0x297   : > { %p908_p7 = pnand %p907_p6, %p1055_p4 }
 0x298   : > { %p913_p12 = por %p912_p11, %p911_p10 }
 0x299   : > { %p909_p9 = pneg %p908_p7 }
 0x29b   : > { %p914_p13 = pnand %p913_p12, %p909_p9 }
 0x29d   : > { %917 = shalt.err (!%p914_p13)
}
 0x29e   : > { %s976_s15 = smov 64   ;;  %s977_s17 = smov 128   ;;  %v507_v55 = vpack.c.bf16 %v501_v54, %v501_v54  ;;  %v807_v56 = vpop.f32.mrf.mxu1  ;;  %vm594_vm9 = vcmask 257152  }
 0x29f   : > { %s978_s24 = smov 4   ;;  %s979_s19 = smov 16  }
 0x2a0   : > { %815 = dma.vmem_to_hbm [thread:$0]  (%p1055_p4), %s1125_s12, 128, %s1123_s16, %s1127_s13, %s976_s15, %s977_s17, %s978_s24   ;;  %v504_v57 = vpop.f32.mrf.mxu1 }
 0x2a1   : > { %509 = vst.msk [vmem:[%s1117_s8] sm:$0xf] %vm508_vm8, %v507_v55 }
 0x2a2   : > { %v808_v58 = vpop.f32.mrf.mxu1 }
 0x2a4   : > { %v581_v59 = vpop.f32.mrf.mxu1 }
 0x2a5   : > { %v787_v60 = vpack.c.bf16 %v581_v59, %v581_v59 }
 0x2a6   : > { %v813_v61 = vpop.f32.mrf.mxu1 }
 0x2a7   : > { %591 = vrot.lane.b32.xlu1 %v787_v60, %s979_s19 }
 0x2a8   : > { %v584_v62 = vpop.f32.mrf.mxu1 }
 0x2aa   : > { %v814_v63 = vpop.f32.mrf.mxu1 }
 0x319   : > { %v592_v0 = vpop.permute.xlu1 %591 }
 0x31a   : > { %595 = vst.msk [vmem:[%s1117_s8] sm:$0xf] %vm594_vm9, %v592_v0 }
 0x31b PF: > { %p821_p4 = scmp.ge.s32.totalorder %s968_s26, 2  ;;  %s645_s7 = sand.u32 1, %s948_s21  }
 0x31c   : > { %s646_s12 = scalar_lea.sflag [#allocation4], %s645_s7 }
 0x31d   : > { %p818_p0 = pnand %p821_p4, %p1062_p8 }
 0x31f   : > { %p819_p1 = pneg %p818_p0 }
 0x321   : > { %943 = dma.done.wait (%p819_p1), %s646_s12, 128  }
 0x322   : > { %945 = vsyncadd (%p819_p1), %s646_s12, 4294967168  ;;  %s20_s26 = sadd.s32 1, %s968_s26   ;;  %s1184_s21 = smov %s952_s22 }
 0x323   : > { %p17_p2 = scmp.ge.s32.totalorder %s20_s26, 4   ;;  %s1185_s22 = smov %s956_s23 }
 0x324   : > { %s1186_s23 = smov %s1068_s10  ;;  %s1187_s24 = smov %s964_s25 }
 0x325   : > { %s1188_s25 = smov %s1190_s29  ;;  %19 = sbr.rel (!%p17_p2) target bundleno = 4 (0x4), region = 101 }
 0x32a   :  { %651 = vsyncpa [#allocation4], 1 }
 0x32b   :  { %653 = vsyncpa [#allocation4 + $0x1], 1 }

// kernel: map_based_mha_forward.3
= control target key start
LH: loop header
LB: loop body
LE: loop exit
PB: predicated region body
PF: predicated region fallthrough
CT: control target
= control target key end

     0   :  { %v225_v1 = vmov 0.0   ;;  %vm226_vm0 = vmmov 0   ;;  %s299_s0 = inlined_call_operand.vmem [shape: bf16[16,32], index: 0, kind: input, shape index: {}]   ;;  %s300_s1 = inlined_call_operand.vmem [shape: f32[16,32], index: 1, kind: input, shape index: {}]   ;;  %s301_s2 = inlined_call_operand.vmem [shape: bf16[32,32], index: 2, kind: input, shape index: {}]   ;;  %s302_s3 = inlined_call_operand.vmem [shape: f32[1,32], index: 3, kind: input, shape index: {}]   ;;  %s303_s4 = inlined_call_operand.vmem [shape: f32[1,32], index: 4, kind: input, shape index: {}]   ;;  %s304_s5 = inlined_call_operand.vmem [shape: f32[1,32], index: 5, kind: input, shape index: {}]   ;;  %s305_s6 = inlined_call_operand.hbm [shape: f32[16,32], index: 6, kind: output, shape index: {}]  }
   0x1   :  { %v196_v0 = vld [vmem:[%s301_s2 + $0x8] sm:$0xff]   ;;  %183 = vmatprep.subr.bf16.mxu0 %v225_v1  ;;  %v197_v2 = vld [vmem:[%s301_s2] sm:$0xff]   ;;  %187 = vmatprep.mubr.msk.bf16.mxu0 %vm226_vm0, %v225_v1 }
   0x2   :  { %184 = vmatpush3.bf16.msra.mxu0 %v196_v0 }
   0x3   :  { %185 = vmatprep.subr.bf16.mxu0 %v225_v1 }
   0x4   :  { %11 = vsyncpa [#allocation3], 0  ;;  %v198_v3 = vld [vmem:[%s299_s0] sm:$0xff]   ;;  %vm55_vm1 = vcmask 261120   ;;  %v107_v16 = vld [vmem:[%s300_s1 + $0x8] sm:$0xff]  ;;  %s227_s9 = smov [#allocation2]  }
   0x5   :  { %v173_v4 = vld [vmem:[%s302_s3] ss:$0 sm:$0xff]  ;;  %s162_s10 = sshll.u32 %s227_s9, 4  ;;  %s163_s10 = int_to_ptr.vmem [resolvable:$true] %s162_s10 }
   0x6   :  { %186 = vmatpush3.bf16.msra.mxu0 %v197_v2  ;;  %v106_v9 = vld [vmem:[%s300_s1] sm:$0xff]  ;;  %s203_s11 = scalar_lea.vmem %s163_s10, 256  ;;  %p208_p1 = scmp.lt.s32.totalorder %s163_s10, %s163_s10 }
   0x7   :  { %v178_v38 = vld [vmem:[%s303_s4] ss:$0 sm:$0xff]  ;;  %p204_p0 = scmp.ne.s32.totalorder %s163_s10, %s203_s11  ;;  %p209_p2 = scmp.lt.s32.totalorder %s203_s11, %s203_s11 }
   0x8   :  { %v179_v40 = vld [vmem:[%s304_s5] ss:$0 sm:$0xff] }
   0x9   :  { %188 = vmatmul.mubr.msk.bf16.vlgmr.msra.gmra.mxu0 %vm55_vm1, %v198_v3  ;;  %p210_p3 = por %p209_p2, %p208_p1 }
   0xb   :  { %p211_p4 = pnand %p210_p3, %p204_p0 }
  0xc9   :  { %v93_v5 = vpop.f32.mrf.mxu0 }
  0xca   :  { %v94_v6 = vadd.f32 %v173_v4, %v93_v5 }
  0xcb   :  { %v189_v7 = vpop.f32.mrf.mxu0 }
  0xcc   :  { %v102_v8 = vmul.f32 0.2, %v94_v6  ;;  %vm100_vm2 = vcmp.ge.f32.partialorder %v94_v6, 0.0 }
  0xcd   :  { %v96_v10 = vpop.f32.mrf.mxu0 }
  0xce   :  { %v97_v11 = vadd.f32 %v173_v4, %v96_v10  ;;  %v104_v12 = vsel %vm100_vm2, %v94_v6, %v102_v8 }
  0xcf   :  { %v190_v13 = vpop.f32.mrf.mxu0  ;;  %v108_v14 = vadd.f32 %v106_v9, %v104_v12 }
  0xd0   :  { %vm101_vm3 = vcmp.ge.f32.partialorder %v97_v11, 0.0  ;;  %v103_v15 = vmul.f32 0.2, %v97_v11 }
  0xd1   :  { %v110_v17 = vsel %vm55_vm1, %v108_v14, 0.0 }
  0xd2   :  { %111 = vadd.xlane.f32.xlu0 %v110_v17  ;;  %v105_v18 = vsel %vm101_vm3, %v97_v11, %v103_v15 }
  0xd3   :  { %v109_v19 = vadd.f32 %v107_v16, %v105_v18 }
  0xd5   :  { %v113_v20 = vsel %vm55_vm1, %v109_v19, 0.0 }
  0xd6   :  { %114 = vadd.xlane.f32.xlu0 %v113_v20 }
 0x15b   :  { %v112_v21 = vpop.xlane.xlu0 %111 }
 0x15c   :  { %v117_v22 = vmul.f32 0.03125, %v112_v21 }
 0x15e   :  { %v119_v23 = vsub.f32 %v108_v14, %v117_v22 }
 0x15f   :  { %v115_v24 = vpop.xlane.xlu0 %114 }
 0x160   :  { %v118_v25 = vmul.f32 0.03125, %v115_v24  ;;  %v121_v26 = vmul.f32 %v119_v23, %v119_v23 }
 0x162   :  { %v120_v27 = vsub.f32 %v109_v19, %v118_v25  ;;  %v123_v28 = vsel %vm55_vm1, %v121_v26, 0.0 }
 0x163   :  { %124 = vadd.xlane.f32.xlu1 %v123_v28 }
 0x164   :  { %v122_v29 = vmul.f32 %v120_v27, %v120_v27 }
 0x166   :  { %v126_v30 = vsel %vm55_vm1, %v122_v29, 0.0 }
 0x167   :  { %127 = vadd.xlane.f32.xlu1 %v126_v30 }
 0x1ec   :  { %v125_v31 = vpop.xlane.xlu1 %124 }
 0x1ed   :  { %v129_v32 = vmul.f32 0.03125, %v125_v31 }
 0x1ef   :  { %v131_v33 = vadd.f32 1e-05, %v129_v32 }
 0x1f0   :  { %v128_v34 = vpop.xlane.xlu1 %127 }
 0x1f1   :  { %199 = vrsqrt.f32 %v131_v33  ;;  %v130_v35 = vmul.f32 0.03125, %v128_v34 }
 0x1f3   :  { %v132_v36 = vadd.f32 1e-05, %v130_v35 }
 0x1f5   :  { %201 = vrsqrt.f32 %v132_v36 }
 0x1fe   :  { %v200_v37 = vpop.eup %199 }
 0x1ff   :  { %v135_v39 = vmul.f32 %v200_v37, %v119_v23 }
 0x201   :  { %v144_v41 = vmul.f32 %v178_v38, %v135_v39 }
 0x202   :  { %v202_v42 = vpop.eup %201 }
 0x203   :  { %v136_v43 = vmul.f32 %v202_v42, %v120_v27  ;;  %v153_v44 = vadd.f32 %v179_v40, %v144_v41 }
 0x205   :  { %v145_v45 = vmul.f32 %v178_v38, %v136_v43  ;;  %155 = vst.msk [vmem:[#allocation2] sm:$0xff] %vm55_vm1, %v153_v44 }
 0x207   :  { %v154_v46 = vadd.f32 %v179_v40, %v145_v45 }
 0x209   :  { %156 = vst.msk [vmem:[#allocation2 + $0x8] sm:$0xff] %vm55_vm1, %v154_v46 }
 0x20a   :  { %214 = shalt.err (!%p211_p4)
}
 0x20b   :  { %s228_s4 = smov 128   ;;  %s229_s5 = smov 8  }
 0x20c   :  { %168 = dma.vmem_to_hbm [thread:$0]  %s163_s10, 256, %s305_s6, [#allocation3], %s228_s4, %s228_s4, %s229_s5  }
 0x20d   :  { %223 = dma.done.wait [#allocation3], 256  }
 0x20e   :  { %224 = vsyncadd [#allocation3], 4294967040 }
 0x20f   :  { %172 = vsyncpa [#allocation3], 1 }

</bundles_post_ra>
